<compile_context>
chip_gen: v5e
topology: v5e:2x2
jax: 0.10.0
libtpu: 0.0.40
codegen_flags: <defaults>
</compile_context>

<pallas_src>
import functools
from math import pi

import jax
import jax.numpy as jnp
from jax import lax
from jax.experimental import pallas as pl
from jax.experimental.pallas import tpu as pltpu

LANE = 128   # lanes per vreg
SUB = 8      # sublanes per vreg / inner chunk size
MAX_S = 64   # max sublanes per grid step (64*128 = 8192 boxes/step)


def _round_up(x, m):
    return (x + m - 1) // m * m


def _recip(x):
    # EUP approximate reciprocal + one Newton-Raphson refinement on the VPU.
    r = pl.reciprocal(x, approx=True)
    return r * (2.0 - x * r)


def _smooth_l1_obb_kernel(pred_ref, target_ref, pos_ref, out_ref, *,
                          beta, loss_weight, n_chunks):
    # pred_ref/target_ref: (5, S, 128) rows (t, r, b, l, angle)
    # pos_ref: (2, S, 128) rows (x, y);  out_ref: (S, 128)
    half_over_beta = 0.5 / beta
    half_beta = 0.5 * beta
    w0 = 10.0 * loss_weight
    w1 = 10.0 * loss_weight
    w2 = 5.0 * loss_weight
    w3 = 5.0 * loss_weight
    w4 = 1.0 * loss_weight

    def sl1(d):
        # NOTE: matches the reference exactly (branches on signed diff, not |diff|)
        return jnp.where(d < beta, d * d * half_over_beta, d - half_beta)

    def dist2obb(dist, x, y):
        # dist: (5, 8, 128)
        t, r, b, l, th = dist[0], dist[1], dist[2], dist[3], dist[4]
        th = 5.0 / 4.0 * pi + th * (pi / 2.0)
        angle = th % (pi / 2.0)
        angle = jnp.where(angle < pi / 4.0, angle + pi / 2.0, angle)
        cos_t = jnp.cos(angle)
        sin_t = jnp.sin(angle)
        x_new = x + (t * cos_t + r * sin_t - b * cos_t - l * sin_t) * 0.5
        y_new = y + (t * sin_t - r * cos_t - b * sin_t + l * cos_t) * 0.5
        h = t + b
        w_ = r + l
        clamp = lambda v: jnp.maximum(v, 1e-6)  # .clamp(min=1e-6) on decoded obb
        return clamp(x_new), clamp(y_new), clamp(h), clamp(w_), clamp(th)

    def chunk(c, carry):
        r0 = pl.multiple_of(c * SUB, SUB)
        sl = pl.ds(r0, SUB)
        pts = pos_ref[:, sl, :]        # (2, 8, 128)
        x, y = pts[0], pts[1]
        px, py, ph, pw, pth = dist2obb(pred_ref[:, sl, :], x, y)
        tx, ty, th_, tw, tth = dist2obb(target_ref[:, sl, :], x, y)

        inv_th = _recip(th_)
        inv_tw = _recip(tw)
        inv_ph = _recip(ph)
        inv_pw = _recip(pw)

        d0 = (tx - px) * inv_th            # (target_x - pred_x) / target_h
        d1 = (ty - py) * inv_tw            # (target_y - pred_y) / target_w
        d2 = jnp.log(th_ * inv_ph)         # log(target_h / pred_h)
        d3 = jnp.log(tw * inv_pw)          # log(target_w / pred_w)
        d4 = (tth - pth) * (2.0 / pi)      # angle diff / (pi/2)

        loss = (w0 * sl1(d0) + w1 * sl1(d1) + w2 * sl1(d2)
                + w3 * sl1(d3) + w4 * sl1(d4))
        out_ref[sl, :] = loss.astype(out_ref.dtype)
        return carry

    lax.fori_loop(0, n_chunks, chunk, 0, unroll=True)


def smooth_l1_loss_obb(pred, target, pos_points, *, beta=1.0, loss_weight=1.0):
    """pred, target: (N, 5) distances (t, r, b, l, angle); pos_points: (N, 2).
    Returns the per-box loss of shape (N,), matching SmoothL1Loss.forward."""
    assert beta > 0
    N = pred.shape[0]
    assert N > 0

    rows = -(-N // LANE)                    # ceil(N / 128) sublane-rows of boxes
    if rows <= 2 * SUB:                     # tiny: single grid step
        R = _round_up(rows, SUB)
        S = R
    elif rows <= 2 * MAX_S:                 # medium: 2 parallel steps (v7x megacore)
        R = _round_up(rows, 2 * SUB)
        S = R // 2
    else:                                   # large: 8192 boxes per step
        S = MAX_S
        R = _round_up(rows, S)
    Np = R * LANE
    grid = R // S
    n_chunks = S // SUB
    pad = Np - N

    def to_cmajor(a):
        # (N, C) -> (C, R, 128) via one pad + transpose + reshape (XLA-fused).
        a = jnp.pad(a.astype(jnp.float32), ((0, pad), (0, 0)),
                    constant_values=1.0)    # finite padding, sliced off below
        return a.T.reshape(a.shape[1], R, LANE)

    pred_t = to_cmajor(pred)        # (5, R, 128)
    target_t = to_cmajor(target)    # (5, R, 128)
    pos_t = to_cmajor(pos_points)   # (2, R, 128)

    kernel = functools.partial(_smooth_l1_obb_kernel, beta=float(beta),
                               loss_weight=float(loss_weight),
                               n_chunks=n_chunks)

    cost = pl.CostEstimate(flops=100 * Np, transcendentals=10 * Np,
                           bytes_accessed=52 * Np)

    out = pl.pallas_call(
        kernel,
        out_shape=jax.ShapeDtypeStruct((R, LANE), jnp.float32),
        grid=(grid,),
        in_specs=[
            pl.BlockSpec((5, S, LANE), lambda i: (0, i, 0)),
            pl.BlockSpec((5, S, LANE), lambda i: (0, i, 0)),
            pl.BlockSpec((2, S, LANE), lambda i: (0, i, 0)),
        ],
        out_specs=pl.BlockSpec((S, LANE), lambda i: (i, 0)),
        compiler_params=pltpu.CompilerParams(
            dimension_semantics=("parallel",)),
        cost_estimate=cost,
    )(pred_t, target_t, pos_t)

    return out.reshape(Np)[:N]


def _reference(pred, target, pos_points, beta=1.0, loss_weight=1.0):
    """Pure-JAX reference replicating the PyTorch module."""
    def dist2obb(pts, dist):
        t, r, b, l, th = (dist[:, 0], dist[:, 1], dist[:, 2], dist[:, 3], dist[:, 4])
        x, y = pts[:, 0], pts[:, 1]
        th = 5.0 / 4.0 * pi + th * pi / 2.0
        angle = th % (pi / 2.0)
        angle = jnp.where(angle < pi / 4.0, angle + pi / 2.0, angle)
        cos_t, sin_t = jnp.cos(angle), jnp.sin(angle)
        x_new = x + (t * cos_t + r * sin_t - b * cos_t - l * sin_t) / 2.0
        y_new = y + (t * sin_t - r * cos_t - b * sin_t + l * cos_t) / 2.0
        h, w = t + b, r + l
        return jnp.stack([x_new, y_new, h, w, th], axis=-1)

    p = jnp.maximum(dist2obb(pos_points, pred), 1e-6)
    t = jnp.maximum(dist2obb(pos_points, target), 1e-6)
    diff = jnp.stack([
        (t[:, 0] - p[:, 0]) / t[:, 2],
        (t[:, 1] - p[:, 1]) / t[:, 3],
        jnp.log(t[:, 2] / p[:, 2]),
        jnp.log(t[:, 3] / p[:, 3]),
        (t[:, 4] - p[:, 4]) / (pi / 2.0),
    ], axis=-1)
    loss = jnp.where(diff < beta, 0.5 * diff * diff / beta, diff - 0.5 * beta)
    reg_weight = jnp.array([10.0, 10.0, 5.0, 5.0, 1.0], dtype=jnp.float32)
    return loss_weight * (loss * reg_weight).sum(axis=1)


def _make_inputs(key, n):
    k1, k2, k3, k4, k5 = jax.random.split(key, 5)
    pred_dist = jax.random.uniform(k1, (n, 4), jnp.float32, 0.5, 2.0)
    pred_ang = jax.random.uniform(k2, (n, 1), jnp.float32, -1.0, 1.0)
    tgt_dist = jax.random.uniform(k3, (n, 4), jnp.float32, 0.5, 2.0)
    tgt_ang = jax.random.uniform(k4, (n, 1), jnp.float32, -1.0, 1.0)
    pred = jnp.concatenate([pred_dist, pred_ang], axis=1)
    target = jnp.concatenate([tgt_dist, tgt_ang], axis=1)
    pos_points = jax.random.uniform(k5, (n, 2), jnp.float32, 0.0, 10.0)
    return pred, target, pos_points


if __name__ == "__main__":
    key = jax.random.PRNGKey(0)
    k_small, k_med = jax.random.split(key)

    # Small case (single grid step path).
    N = 8
    pred, target, pos_points = _make_inputs(k_small, N)
    out = smooth_l1_loss_obb(pred, target, pos_points, beta=1.0, loss_weight=1.0)
    out = jax.block_until_ready(out)
    ref = _reference(pred, target, pos_points)
    assert out.shape == (N,)
    assert jnp.allclose(out, ref, rtol=5e-5, atol=1e-5), (out, ref)

    # Medium case (2-step parallel grid + multi-chunk inner loop path).
    N2 = 2500
    pred2, target2, pos2 = _make_inputs(k_med, N2)
    out2 = smooth_l1_loss_obb(pred2, target2, pos2, beta=1.0, loss_weight=0.5)
    out2 = jax.block_until_ready(out2)
    ref2 = _reference(pred2, target2, pos2, loss_weight=0.5)
    assert out2.shape == (N2,)
    assert jnp.allclose(out2, ref2, rtol=5e-5, atol=1e-5)

    print("KERNEL_OK")
</pallas_src>

<mosaic_0001>
module attributes {stable_mosaic.version = 11 : i64} {
  func.func @_smooth_l1_obb_kernel(%arg0: i32, %arg1: memref<5x8x128xf32, #tpu.memory_space<vmem>>, %arg2: memref<5x8x128xf32, #tpu.memory_space<vmem>>, %arg3: memref<2x8x128xf32, #tpu.memory_space<vmem>>, %arg4: memref<8x128xf32, #tpu.memory_space<vmem>>) attributes {dimension_semantics = [#tpu.dimension_semantics<parallel>], iteration_bounds = array<i64: 1>, scalar_prefetch = 0 : i64, scratch_operands = 0 : i64, tpu.core_type = #tpu.core_type<tc>, window_params = [{transform_indices = @transform_0, window_bounds = array<i64: 5, 8, 128>}, {transform_indices = @transform_1, window_bounds = array<i64: 5, 8, 128>}, {transform_indices = @transform_2, window_bounds = array<i64: 2, 8, 128>}, {transform_indices = @transform_3, window_bounds = array<i64: 8, 128>}]} {
    %c0_i32 = arith.constant 0 : i32
    %c8_i32 = arith.constant 8 : i32
    %0 = arith.muli %c0_i32, %c8_i32 : i32
    %1 = tpu.assume_multiple %0, 8 : i32
    %c0 = arith.constant 0 : index
    %2 = arith.index_cast %1 : i32 to index
    %c0_0 = arith.constant 0 : index
    %3 = vector.load %arg3[%c0, %2, %c0_0] : memref<2x8x128xf32, #tpu.memory_space<vmem>>, vector<2x8x128xf32>
    %4 = vector.extract_strided_slice %3 {offsets = [0, 0, 0], sizes = [1, 8, 128], strides = [1, 1, 1]} : vector<2x8x128xf32> to vector<1x8x128xf32>
    %5 = vector.shape_cast %4 : vector<1x8x128xf32> to vector<8x128xf32>
    %6 = vector.extract_strided_slice %3 {offsets = [1, 0, 0], sizes = [1, 8, 128], strides = [1, 1, 1]} : vector<2x8x128xf32> to vector<1x8x128xf32>
    %7 = vector.shape_cast %6 : vector<1x8x128xf32> to vector<8x128xf32>
    %c0_1 = arith.constant 0 : index
    %8 = arith.index_cast %1 : i32 to index
    %c0_2 = arith.constant 0 : index
    %9 = vector.load %arg1[%c0_1, %8, %c0_2] : memref<5x8x128xf32, #tpu.memory_space<vmem>>, vector<5x8x128xf32>
    %10 = vector.extract_strided_slice %9 {offsets = [0, 0, 0], sizes = [1, 8, 128], strides = [1, 1, 1]} : vector<5x8x128xf32> to vector<1x8x128xf32>
    %11 = vector.shape_cast %10 : vector<1x8x128xf32> to vector<8x128xf32>
    %12 = vector.extract_strided_slice %9 {offsets = [1, 0, 0], sizes = [1, 8, 128], strides = [1, 1, 1]} : vector<5x8x128xf32> to vector<1x8x128xf32>
    %13 = vector.shape_cast %12 : vector<1x8x128xf32> to vector<8x128xf32>
    %14 = vector.extract_strided_slice %9 {offsets = [2, 0, 0], sizes = [1, 8, 128], strides = [1, 1, 1]} : vector<5x8x128xf32> to vector<1x8x128xf32>
    %15 = vector.shape_cast %14 : vector<1x8x128xf32> to vector<8x128xf32>
    %16 = vector.extract_strided_slice %9 {offsets = [3, 0, 0], sizes = [1, 8, 128], strides = [1, 1, 1]} : vector<5x8x128xf32> to vector<1x8x128xf32>
    %17 = vector.shape_cast %16 : vector<1x8x128xf32> to vector<8x128xf32>
    %18 = vector.extract_strided_slice %9 {offsets = [4, 0, 0], sizes = [1, 8, 128], strides = [1, 1, 1]} : vector<5x8x128xf32> to vector<1x8x128xf32>
    %19 = vector.shape_cast %18 : vector<1x8x128xf32> to vector<8x128xf32>
    %cst = arith.constant 1.57079637 : f32
    %20 = vector.broadcast %cst : f32 to vector<8x128xf32>
    %21 = arith.mulf %19, %20 : vector<8x128xf32>
    %cst_3 = arith.constant 3.92699075 : f32
    %22 = vector.broadcast %cst_3 : f32 to vector<8x128xf32>
    %23 = arith.addf %22, %21 : vector<8x128xf32>
    %cst_4 = arith.constant 1.57079637 : f32
    %24 = vector.broadcast %cst_4 : f32 to vector<8x128xf32>
    %25 = arith.remf %23, %24 : vector<8x128xf32>
    %cst_5 = arith.constant 0.000000e+00 : f32
    %26 = vector.broadcast %cst_5 : f32 to vector<8x128xf32>
    %27 = arith.cmpf one, %25, %26 : vector<8x128xf32>
    %cst_6 = arith.constant 0.000000e+00 : f32
    %28 = vector.broadcast %cst_6 : f32 to vector<8x128xf32>
    %29 = arith.cmpf olt, %25, %28 : vector<8x128xf32>
    %cst_7 = arith.constant 0.000000e+00 : f32
    %30 = arith.cmpf olt, %cst_4, %cst_7 : f32
    %31 = vector.broadcast %30 : i1 to vector<8x128xi1>
    %32 = vector.broadcast %31 : vector<8x128xi1> to vector<8x128xi1>
    %33 = arith.xori %29, %32 : vector<8x128xi1>
    %34 = arith.andi %33, %27 : vector<8x128xi1>
    %35 = vector.broadcast %cst_4 : f32 to vector<8x128xf32>
    %36 = arith.addf %25, %35 : vector<8x128xf32>
    %37 = arith.select %34, %36, %25 : vector<8x128xi1>, vector<8x128xf32>
    %cst_8 = arith.constant 0.785398185 : f32
    %38 = vector.broadcast %cst_8 : f32 to vector<8x128xf32>
    %39 = arith.cmpf olt, %37, %38 : vector<8x128xf32>
    %cst_9 = arith.constant 1.57079637 : f32
    %40 = vector.broadcast %cst_9 : f32 to vector<8x128xf32>
    %41 = arith.addf %37, %40 : vector<8x128xf32>
    %42 = arith.select %39, %41, %37 : vector<8x128xi1>, vector<8x128xf32>
    %43 = math.cos %42 : vector<8x128xf32>
    %44 = math.sin %42 : vector<8x128xf32>
    %45 = arith.mulf %11, %43 : vector<8x128xf32>
    %46 = arith.mulf %13, %44 : vector<8x128xf32>
    %47 = arith.addf %45, %46 : vector<8x128xf32>
    %48 = arith.mulf %15, %43 : vector<8x128xf32>
    %49 = arith.subf %47, %48 : vector<8x128xf32>
    %50 = arith.mulf %17, %44 : vector<8x128xf32>
    %51 = arith.subf %49, %50 : vector<8x128xf32>
    %cst_10 = arith.constant 5.000000e-01 : f32
    %52 = vector.broadcast %cst_10 : f32 to vector<8x128xf32>
    %53 = arith.mulf %51, %52 : vector<8x128xf32>
    %54 = arith.addf %5, %53 : vector<8x128xf32>
    %55 = arith.mulf %11, %44 : vector<8x128xf32>
    %56 = arith.mulf %13, %43 : vector<8x128xf32>
    %57 = arith.subf %55, %56 : vector<8x128xf32>
    %58 = arith.mulf %15, %44 : vector<8x128xf32>
    %59 = arith.subf %57, %58 : vector<8x128xf32>
    %60 = arith.mulf %17, %43 : vector<8x128xf32>
    %61 = arith.addf %59, %60 : vector<8x128xf32>
    %cst_11 = arith.constant 5.000000e-01 : f32
    %62 = vector.broadcast %cst_11 : f32 to vector<8x128xf32>
    %63 = arith.mulf %61, %62 : vector<8x128xf32>
    %64 = arith.addf %7, %63 : vector<8x128xf32>
    %65 = arith.addf %11, %15 : vector<8x128xf32>
    %66 = arith.addf %13, %17 : vector<8x128xf32>
    %cst_12 = arith.constant 9.99999997E-7 : f32
    %67 = vector.broadcast %cst_12 : f32 to vector<8x128xf32>
    %68 = arith.maximumf %54, %67 : vector<8x128xf32>
    %cst_13 = arith.constant 9.99999997E-7 : f32
    %69 = vector.broadcast %cst_13 : f32 to vector<8x128xf32>
    %70 = arith.maximumf %64, %69 : vector<8x128xf32>
    %cst_14 = arith.constant 9.99999997E-7 : f32
    %71 = vector.broadcast %cst_14 : f32 to vector<8x128xf32>
    %72 = arith.maximumf %65, %71 : vector<8x128xf32>
    %cst_15 = arith.constant 9.99999997E-7 : f32
    %73 = vector.broadcast %cst_15 : f32 to vector<8x128xf32>
    %74 = arith.maximumf %66, %73 : vector<8x128xf32>
    %cst_16 = arith.constant 9.99999997E-7 : f32
    %75 = vector.broadcast %cst_16 : f32 to vector<8x128xf32>
    %76 = arith.maximumf %23, %75 : vector<8x128xf32>
    %c0_17 = arith.constant 0 : index
    %77 = arith.index_cast %1 : i32 to index
    %c0_18 = arith.constant 0 : index
    %78 = vector.load %arg2[%c0_17, %77, %c0_18] : memref<5x8x128xf32, #tpu.memory_space<vmem>>, vector<5x8x128xf32>
    %79 = vector.extract_strided_slice %78 {offsets = [0, 0, 0], sizes = [1, 8, 128], strides = [1, 1, 1]} : vector<5x8x128xf32> to vector<1x8x128xf32>
    %80 = vector.shape_cast %79 : vector<1x8x128xf32> to vector<8x128xf32>
    %81 = vector.extract_strided_slice %78 {offsets = [1, 0, 0], sizes = [1, 8, 128], strides = [1, 1, 1]} : vector<5x8x128xf32> to vector<1x8x128xf32>
    %82 = vector.shape_cast %81 : vector<1x8x128xf32> to vector<8x128xf32>
    %83 = vector.extract_strided_slice %78 {offsets = [2, 0, 0], sizes = [1, 8, 128], strides = [1, 1, 1]} : vector<5x8x128xf32> to vector<1x8x128xf32>
    %84 = vector.shape_cast %83 : vector<1x8x128xf32> to vector<8x128xf32>
    %85 = vector.extract_strided_slice %78 {offsets = [3, 0, 0], sizes = [1, 8, 128], strides = [1, 1, 1]} : vector<5x8x128xf32> to vector<1x8x128xf32>
    %86 = vector.shape_cast %85 : vector<1x8x128xf32> to vector<8x128xf32>
    %87 = vector.extract_strided_slice %78 {offsets = [4, 0, 0], sizes = [1, 8, 128], strides = [1, 1, 1]} : vector<5x8x128xf32> to vector<1x8x128xf32>
    %88 = vector.shape_cast %87 : vector<1x8x128xf32> to vector<8x128xf32>
    %cst_19 = arith.constant 1.57079637 : f32
    %89 = vector.broadcast %cst_19 : f32 to vector<8x128xf32>
    %90 = arith.mulf %88, %89 : vector<8x128xf32>
    %cst_20 = arith.constant 3.92699075 : f32
    %91 = vector.broadcast %cst_20 : f32 to vector<8x128xf32>
    %92 = arith.addf %91, %90 : vector<8x128xf32>
    %cst_21 = arith.constant 1.57079637 : f32
    %93 = vector.broadcast %cst_21 : f32 to vector<8x128xf32>
    %94 = arith.remf %92, %93 : vector<8x128xf32>
    %cst_22 = arith.constant 0.000000e+00 : f32
    %95 = vector.broadcast %cst_22 : f32 to vector<8x128xf32>
    %96 = arith.cmpf one, %94, %95 : vector<8x128xf32>
    %cst_23 = arith.constant 0.000000e+00 : f32
    %97 = vector.broadcast %cst_23 : f32 to vector<8x128xf32>
    %98 = arith.cmpf olt, %94, %97 : vector<8x128xf32>
    %cst_24 = arith.constant 0.000000e+00 : f32
    %99 = arith.cmpf olt, %cst_21, %cst_24 : f32
    %100 = vector.broadcast %99 : i1 to vector<8x128xi1>
    %101 = vector.broadcast %100 : vector<8x128xi1> to vector<8x128xi1>
    %102 = arith.xori %98, %101 : vector<8x128xi1>
    %103 = arith.andi %102, %96 : vector<8x128xi1>
    %104 = vector.broadcast %cst_21 : f32 to vector<8x128xf32>
    %105 = arith.addf %94, %104 : vector<8x128xf32>
    %106 = arith.select %103, %105, %94 : vector<8x128xi1>, vector<8x128xf32>
    %cst_25 = arith.constant 0.785398185 : f32
    %107 = vector.broadcast %cst_25 : f32 to vector<8x128xf32>
    %108 = arith.cmpf olt, %106, %107 : vector<8x128xf32>
    %cst_26 = arith.constant 1.57079637 : f32
    %109 = vector.broadcast %cst_26 : f32 to vector<8x128xf32>
    %110 = arith.addf %106, %109 : vector<8x128xf32>
    %111 = arith.select %108, %110, %106 : vector<8x128xi1>, vector<8x128xf32>
    %112 = math.cos %111 : vector<8x128xf32>
    %113 = math.sin %111 : vector<8x128xf32>
    %114 = arith.mulf %80, %112 : vector<8x128xf32>
    %115 = arith.mulf %82, %113 : vector<8x128xf32>
    %116 = arith.addf %114, %115 : vector<8x128xf32>
    %117 = arith.mulf %84, %112 : vector<8x128xf32>
    %118 = arith.subf %116, %117 : vector<8x128xf32>
    %119 = arith.mulf %86, %113 : vector<8x128xf32>
    %120 = arith.subf %118, %119 : vector<8x128xf32>
    %cst_27 = arith.constant 5.000000e-01 : f32
    %121 = vector.broadcast %cst_27 : f32 to vector<8x128xf32>
    %122 = arith.mulf %120, %121 : vector<8x128xf32>
    %123 = arith.addf %5, %122 : vector<8x128xf32>
    %124 = arith.mulf %80, %113 : vector<8x128xf32>
    %125 = arith.mulf %82, %112 : vector<8x128xf32>
    %126 = arith.subf %124, %125 : vector<8x128xf32>
    %127 = arith.mulf %84, %113 : vector<8x128xf32>
    %128 = arith.subf %126, %127 : vector<8x128xf32>
    %129 = arith.mulf %86, %112 : vector<8x128xf32>
    %130 = arith.addf %128, %129 : vector<8x128xf32>
    %cst_28 = arith.constant 5.000000e-01 : f32
    %131 = vector.broadcast %cst_28 : f32 to vector<8x128xf32>
    %132 = arith.mulf %130, %131 : vector<8x128xf32>
    %133 = arith.addf %7, %132 : vector<8x128xf32>
    %134 = arith.addf %80, %84 : vector<8x128xf32>
    %135 = arith.addf %82, %86 : vector<8x128xf32>
    %cst_29 = arith.constant 9.99999997E-7 : f32
    %136 = vector.broadcast %cst_29 : f32 to vector<8x128xf32>
    %137 = arith.maximumf %123, %136 : vector<8x128xf32>
    %cst_30 = arith.constant 9.99999997E-7 : f32
    %138 = vector.broadcast %cst_30 : f32 to vector<8x128xf32>
    %139 = arith.maximumf %133, %138 : vector<8x128xf32>
    %cst_31 = arith.constant 9.99999997E-7 : f32
    %140 = vector.broadcast %cst_31 : f32 to vector<8x128xf32>
    %141 = arith.maximumf %134, %140 : vector<8x128xf32>
    %cst_32 = arith.constant 9.99999997E-7 : f32
    %142 = vector.broadcast %cst_32 : f32 to vector<8x128xf32>
    %143 = arith.maximumf %135, %142 : vector<8x128xf32>
    %cst_33 = arith.constant 9.99999997E-7 : f32
    %144 = vector.broadcast %cst_33 : f32 to vector<8x128xf32>
    %145 = arith.maximumf %92, %144 : vector<8x128xf32>
    %146 = tpu.reciprocal %141 {approx = true} : vector<8x128xf32> -> vector<8x128xf32>
    %147 = arith.mulf %141, %146 : vector<8x128xf32>
    %cst_34 = arith.constant 2.000000e+00 : f32
    %148 = vector.broadcast %cst_34 : f32 to vector<8x128xf32>
    %149 = arith.subf %148, %147 : vector<8x128xf32>
    %150 = arith.mulf %146, %149 : vector<8x128xf32>
    %151 = tpu.reciprocal %143 {approx = true} : vector<8x128xf32> -> vector<8x128xf32>
    %152 = arith.mulf %143, %151 : vector<8x128xf32>
    %cst_35 = arith.constant 2.000000e+00 : f32
    %153 = vector.broadcast %cst_35 : f32 to vector<8x128xf32>
    %154 = arith.subf %153, %152 : vector<8x128xf32>
    %155 = arith.mulf %151, %154 : vector<8x128xf32>
    %156 = tpu.reciprocal %72 {approx = true} : vector<8x128xf32> -> vector<8x128xf32>
    %157 = arith.mulf %72, %156 : vector<8x128xf32>
    %cst_36 = arith.constant 2.000000e+00 : f32
    %158 = vector.broadcast %cst_36 : f32 to vector<8x128xf32>
    %159 = arith.subf %158, %157 : vector<8x128xf32>
    %160 = arith.mulf %156, %159 : vector<8x128xf32>
    %161 = tpu.reciprocal %74 {approx = true} : vector<8x128xf32> -> vector<8x128xf32>
    %162 = arith.mulf %74, %161 : vector<8x128xf32>
    %cst_37 = arith.constant 2.000000e+00 : f32
    %163 = vector.broadcast %cst_37 : f32 to vector<8x128xf32>
    %164 = arith.subf %163, %162 : vector<8x128xf32>
    %165 = arith.mulf %161, %164 : vector<8x128xf32>
    %166 = arith.subf %137, %68 : vector<8x128xf32>
    %167 = arith.mulf %166, %150 : vector<8x128xf32>
    %168 = arith.subf %139, %70 : vector<8x128xf32>
    %169 = arith.mulf %168, %155 : vector<8x128xf32>
    %170 = arith.mulf %141, %160 : vector<8x128xf32>
    %171 = math.log %170 : vector<8x128xf32>
    %172 = arith.mulf %143, %165 : vector<8x128xf32>
    %173 = math.log %172 : vector<8x128xf32>
    %174 = arith.subf %145, %76 : vector<8x128xf32>
    %cst_38 = arith.constant 0.636619746 : f32
    %175 = vector.broadcast %cst_38 : f32 to vector<8x128xf32>
    %176 = arith.mulf %174, %175 : vector<8x128xf32>
    %cst_39 = arith.constant 1.000000e+00 : f32
    %177 = vector.broadcast %cst_39 : f32 to vector<8x128xf32>
    %178 = arith.cmpf olt, %167, %177 : vector<8x128xf32>
    %179 = arith.mulf %167, %167 : vector<8x128xf32>
    %cst_40 = arith.constant 5.000000e-01 : f32
    %180 = vector.broadcast %cst_40 : f32 to vector<8x128xf32>
    %181 = arith.mulf %179, %180 : vector<8x128xf32>
    %cst_41 = arith.constant 5.000000e-01 : f32
    %182 = vector.broadcast %cst_41 : f32 to vector<8x128xf32>
    %183 = arith.subf %167, %182 : vector<8x128xf32>
    %184 = arith.select %178, %181, %183 : vector<8x128xi1>, vector<8x128xf32>
    %cst_42 = arith.constant 1.000000e+01 : f32
    %185 = vector.broadcast %cst_42 : f32 to vector<8x128xf32>
    %186 = arith.mulf %185, %184 : vector<8x128xf32>
    %cst_43 = arith.constant 1.000000e+00 : f32
    %187 = vector.broadcast %cst_43 : f32 to vector<8x128xf32>
    %188 = arith.cmpf olt, %169, %187 : vector<8x128xf32>
    %189 = arith.mulf %169, %169 : vector<8x128xf32>
    %cst_44 = arith.constant 5.000000e-01 : f32
    %190 = vector.broadcast %cst_44 : f32 to vector<8x128xf32>
    %191 = arith.mulf %189, %190 : vector<8x128xf32>
    %cst_45 = arith.constant 5.000000e-01 : f32
    %192 = vector.broadcast %cst_45 : f32 to vector<8x128xf32>
    %193 = arith.subf %169, %192 : vector<8x128xf32>
    %194 = arith.select %188, %191, %193 : vector<8x128xi1>, vector<8x128xf32>
    %cst_46 = arith.constant 1.000000e+01 : f32
    %195 = vector.broadcast %cst_46 : f32 to vector<8x128xf32>
    %196 = arith.mulf %195, %194 : vector<8x128xf32>
    %197 = arith.addf %186, %196 : vector<8x128xf32>
    %cst_47 = arith.constant 1.000000e+00 : f32
    %198 = vector.broadcast %cst_47 : f32 to vector<8x128xf32>
    %199 = arith.cmpf olt, %171, %198 : vector<8x128xf32>
    %200 = arith.mulf %171, %171 : vector<8x128xf32>
    %cst_48 = arith.constant 5.000000e-01 : f32
    %201 = vector.broadcast %cst_48 : f32 to vector<8x128xf32>
    %202 = arith.mulf %200, %201 : vector<8x128xf32>
    %cst_49 = arith.constant 5.000000e-01 : f32
    %203 = vector.broadcast %cst_49 : f32 to vector<8x128xf32>
    %204 = arith.subf %171, %203 : vector<8x128xf32>
    %205 = arith.select %199, %202, %204 : vector<8x128xi1>, vector<8x128xf32>
    %cst_50 = arith.constant 5.000000e+00 : f32
    %206 = vector.broadcast %cst_50 : f32 to vector<8x128xf32>
    %207 = arith.mulf %206, %205 : vector<8x128xf32>
    %208 = arith.addf %197, %207 : vector<8x128xf32>
    %cst_51 = arith.constant 1.000000e+00 : f32
    %209 = vector.broadcast %cst_51 : f32 to vector<8x128xf32>
    %210 = arith.cmpf olt, %173, %209 : vector<8x128xf32>
    %211 = arith.mulf %173, %173 : vector<8x128xf32>
    %cst_52 = arith.constant 5.000000e-01 : f32
    %212 = vector.broadcast %cst_52 : f32 to vector<8x128xf32>
    %213 = arith.mulf %211, %212 : vector<8x128xf32>
    %cst_53 = arith.constant 5.000000e-01 : f32
    %214 = vector.broadcast %cst_53 : f32 to vector<8x128xf32>
    %215 = arith.subf %173, %214 : vector<8x128xf32>
    %216 = arith.select %210, %213, %215 : vector<8x128xi1>, vector<8x128xf32>
    %cst_54 = arith.constant 5.000000e+00 : f32
    %217 = vector.broadcast %cst_54 : f32 to vector<8x128xf32>
    %218 = arith.mulf %217, %216 : vector<8x128xf32>
    %219 = arith.addf %208, %218 : vector<8x128xf32>
    %cst_55 = arith.constant 1.000000e+00 : f32
    %220 = vector.broadcast %cst_55 : f32 to vector<8x128xf32>
    %221 = arith.cmpf olt, %176, %220 : vector<8x128xf32>
    %222 = arith.mulf %176, %176 : vector<8x128xf32>
    %cst_56 = arith.constant 5.000000e-01 : f32
    %223 = vector.broadcast %cst_56 : f32 to vector<8x128xf32>
    %224 = arith.mulf %222, %223 : vector<8x128xf32>
    %cst_57 = arith.constant 5.000000e-01 : f32
    %225 = vector.broadcast %cst_57 : f32 to vector<8x128xf32>
    %226 = arith.subf %176, %225 : vector<8x128xf32>
    %227 = arith.select %221, %224, %226 : vector<8x128xi1>, vector<8x128xf32>
    %cst_58 = arith.constant 1.000000e+00 : f32
    %228 = vector.broadcast %cst_58 : f32 to vector<8x128xf32>
    %229 = arith.mulf %228, %227 : vector<8x128xf32>
    %230 = arith.addf %219, %229 : vector<8x128xf32>
    %231 = arith.index_cast %1 : i32 to index
    %c0_59 = arith.constant 0 : index
    %232 = vector.load %arg4[%231, %c0_59] : memref<8x128xf32, #tpu.memory_space<vmem>>, vector<8x128xf32>
    tpu.vector_store %arg4[%231, %c0_59], %230 {strides = array<i32>} : memref<8x128xf32, #tpu.memory_space<vmem>>, vector<8x128xf32>,
    %c1_i32 = arith.constant 1 : i32
    return
  }
  func.func @transform_0(%arg0: i32) -> (i32, i32, i32) {
    %c0_i32 = arith.constant 0 : i32
    %c0_i32_0 = arith.constant 0 : i32
    %c0_i32_1 = arith.constant 0 : i32
    return %c0_i32, %arg0, %c0_i32_0 : i32, i32, i32
  }
  func.func @transform_1(%arg0: i32) -> (i32, i32, i32) {
    %c0_i32 = arith.constant 0 : i32
    %c0_i32_0 = arith.constant 0 : i32
    %c0_i32_1 = arith.constant 0 : i32
    return %c0_i32, %arg0, %c0_i32_0 : i32, i32, i32
  }
  func.func @transform_2(%arg0: i32) -> (i32, i32, i32) {
    %c0_i32 = arith.constant 0 : i32
    %c0_i32_0 = arith.constant 0 : i32
    %c0_i32_1 = arith.constant 0 : i32
    return %c0_i32, %arg0, %c0_i32_0 : i32, i32, i32
  }
  func.func @transform_3(%arg0: i32) -> (i32, i32) {
    %c0_i32 = arith.constant 0 : i32
    %c0_i32_0 = arith.constant 0 : i32
    return %arg0, %c0_i32 : i32, i32
  }
}

</mosaic_0001>

<bundles_post_ra>
// kernel: tpu_custom_call.1
= control target key start
LH: loop header
LB: loop body
LE: loop exit
PB: predicated region body
PF: predicated region fallthrough
CT: control target
= control target key end

     0   :  { %8 = vsyncpa [#allocation3], 0  ;;  %s1304_s0 = inlined_call_operand.hbm [shape: f32[5,8,128], index: 0, kind: input, shape index: {}]   ;;  %s1305_s1 = inlined_call_operand.hbm [shape: f32[5,8,128], index: 1, kind: input, shape index: {}]   ;;  %s1306_s2 = inlined_call_operand.hbm [shape: f32[2,8,128], index: 2, kind: input, shape index: {}]   ;;  %s1307_s3 = inlined_call_operand.hbm [shape: f32[8,128], index: 3, kind: output, shape index: {}]  }
   0x1   :  { %9 = vsyncpa [#allocation6], 0 }
   0x2   :  { %10 = vsyncpa [#allocation4], 0  ;;  %s28_s14 = sshll.u32 %s1305_s1, 4  ;;  %s1023_s15 = smov [#allocation5]   ;;  %s29_s14 = int_to_ptr.hbm [resolvable:$true] %s28_s14 }
   0x3   :  { %s30_s16 = sshll.u32 %s1023_s15, 4  ;;  %s15_s19 = sshll.u32 %s1304_s0, 4  ;;  %s31_s16 = int_to_ptr.vmem [resolvable:$true] %s30_s16  ;;  %s16_s19 = int_to_ptr.hbm [resolvable:$true] %s15_s19 }
   0x4   :  { %s1024_s20 = smov 128   ;;  %s1025_s21 = smov 8  }
   0x5   :  { %36 = dma.hbm_to_vmem [thread:$0]  %s29_s14, 640, %s31_s16, [#allocation6], %s1024_s20, %s1024_s20, %s1025_s21  }
   0x6   :  { %s1026_s22 = smov [#allocation2]   ;;  %s41_s26 = sshll.u32 %s1306_s2, 4  ;;  %s42_s26 = int_to_ptr.hbm [resolvable:$true] %s41_s26 }
   0x7   :  { %s17_s23 = sshll.u32 %s1026_s22, 4  ;;  %s1027_s1 = smov [#allocation7]   ;;  %s18_s23 = int_to_ptr.vmem [resolvable:$true] %s17_s23 }
   0x8   :  { %23 = dma.hbm_to_vmem [thread:$0]  %s16_s19, 640, %s18_s23, [#allocation3], %s1024_s20, %s1024_s20, %s1025_s21  }
   0x9   :  { %s43_s27 = sshll.u32 %s1027_s1, 4  ;;  %s44_s27 = int_to_ptr.vmem [resolvable:$true] %s43_s27 }
   0xa   :  { %49 = dma.hbm_to_vmem [thread:$0]  %s42_s26, 256, %s44_s27, [#allocation6], %s1024_s20, %s1024_s20, %s1025_s21  }
   0xb   :  { %1017 = dma.done.wait [#allocation3], 640  }
   0xc   :  { %1018 = vsyncadd [#allocation3], 4294966656 }
   0xd   :  { %1019 = dma.done.wait [#allocation6], 896  }
   0xe   :  { %1020 = vsyncadd [#allocation6], 4294966400  ;;  %v1028_v0 = vmov 1.5707964   ;;  %v68_v3 = vld [vmem:[#allocation2 + $0x20] sm:$0xff]  ;;  %v434_v4 = vld [vmem:[#allocation5 + $0x20] sm:$0xff] }
   0xf   :  { %907 = vrcp.f32 %v1028_v0  ;;  %v69_v5 = vmul.f32 1.5707964, %v68_v3  ;;  %v435_v7 = vmul.f32 1.5707964, %v434_v4  ;;  %v1029_v60 = vmov 683565275  }
  0x10   :  { %v1030_v62 = vmov 2475754826   ;;  %v1031_v0 = vmov 2131351028   ;;  %v1033_v4 = vmov 920167782  }
  0x11   :  { %v1066_v8 = vadd.f32 3.9269907, %v69_v5  ;;  %v1068_v10 = vadd.f32 3.9269907, %v435_v7  ;;  %s1036_s0 = smov [#allocation8]   ;;  %s865_s30 = sshll.u32 %s1307_s3, 4  ;;  %s866_s30 = int_to_ptr.hbm [resolvable:$true] %s865_s30 }
  0x12   :  { %s863_s2 = sshll.u32 %s1036_s0, 4  ;;  %s864_s2 = int_to_ptr.vmem [resolvable:$true] %s863_s2 }
  0x13   :  { %v71_v11 = vand.u32 2147483647, %v1066_v8  ;;  %v437_v13 = vand.u32 2147483647, %v1068_v10  ;;  %v86_v23 = vand.u32 2147483648, %v1066_v8  ;;  %v452_v24 = vand.u32 2147483648, %v1068_v10 }
  0x15   :  { %v908_v1 = vpop.eup %907 }
  0x16   :  { %v73_v2 = vmul.f32 1.5707964, %v908_v1  ;;  %vm77_vm0 = vweird.f32 %v908_v1 }
  0x18   :  { %v74_v6 = vsub.f32 1.0, %v73_v2  ;;  %v1032_v2 = vmov 2102212464  }
  0x1a   :  { %v75_v9 = vmul.f32 %v908_v1, %v74_v6 }
  0x1c   :  { %v76_v12 = vadd.f32 %v908_v1, %v75_v9 }
  0x1e   :  { %v78_v14 = vsel %vm77_vm0, %v908_v1, %v76_v12 }
  0x1f   :  { %v79_v15 = vmul.f32 %v78_v14, %v71_v11  ;;  %v445_v16 = vmul.f32 %v437_v13, %v78_v14 }
  0x21   :  { %v80_v17 = vfloor.f32 %v79_v15  ;;  %v446_v18 = vfloor.f32 %v445_v16  ;;  %v1034_v15 = vmov 1326507024  }
  0x23   :  { %v81_v19 = vmul.f32 1.5707964, %v80_v17  ;;  %v447_v20 = vmul.f32 1.5707964, %v446_v18 }
  0x25   :  { %v82_v21 = vsub.f32 %v71_v11, %v81_v19  ;;  %v448_v22 = vsub.f32 %v437_v13, %v447_v20 }
  0x27   :  { %vm83_vm1 = vcmp.eq.f32.partialorder %v82_v21, 1.5707964  ;;  %vm449_vm2 = vcmp.eq.f32.partialorder %v448_v22, 1.5707964 }
  0x28   :  { %v84_v25 = vsel %vm83_vm1, 0.0, %v82_v21  ;;  %v450_v26 = vsel %vm449_vm2, 0.0, %v448_v22 }
  0x29   :  { %v85_v27 = vand.u32 2147483647, %v84_v25  ;;  %v451_v28 = vand.u32 2147483647, %v450_v26 }
  0x2b   :  { %v87_v29 = vor.u32 %v86_v23, %v85_v27  ;;  %v453_v30 = vor.u32 %v452_v24, %v451_v28 }
  0x2d   :  { %vm88_vm3 = vcmp.ne.f32.partialorder %v87_v29, 0.0  ;;  %vm89_vm4 = vcmp.lt.f32.partialorder %v87_v29, 0.0  ;;  %v91_v31 = vadd.f32 1.5707964, %v87_v29  ;;  %vm454_vm5 = vcmp.ne.f32.partialorder %v453_v30, 0.0 }
  0x2e   :  { %vm90_vm6 = vmand %vm89_vm4, %vm88_vm3  ;;  %vm455_vm7 = vcmp.lt.f32.partialorder %v453_v30, 0.0  ;;  %v457_v32 = vadd.f32 1.5707964, %v453_v30 }
  0x2f   :  { %v92_v33 = vsel %vm90_vm6, %v91_v31, %v87_v29  ;;  %vm456_vm8 = vmand %vm455_vm7, %vm454_vm5 }
  0x30   :  { %vm93_vm9 = vcmp.lt.f32.partialorder %v92_v33, 0.7853982  ;;  %v94_v34 = vadd.f32 1.5707964, %v92_v33  ;;  %v458_v35 = vsel %vm456_vm8, %v457_v32, %v453_v30 }
  0x31   :  { %vm459_vm10 = vcmp.lt.f32.partialorder %v458_v35, 0.7853982  ;;  %v460_v36 = vadd.f32 1.5707964, %v458_v35 }
  0x32   :  { %v1074_v37 = vsel %vm93_vm9, %v94_v34, %v92_v33 }
  0x33   :  { %v96_v38 = vand.u32 2147483647, %v1074_v37  ;;  %v99_v39 = vand.u32 2139095040, %v1074_v37  ;;  %v1078_v40 = vsel %vm459_vm10, %v460_v36, %v458_v35 }
  0x34   :  { %v462_v41 = vand.u32 2147483647, %v1078_v40  ;;  %v465_v42 = vand.u32 2139095040, %v1078_v40 }
  0x35   :  { %v100_v43 = vshrl.u32 %v99_v39, 23  ;;  %v103_v44 = vand.u32 8388607, %v96_v38 }
  0x36   :  { %v466_v45 = vshrl.u32 %v465_v42, 23  ;;  %v469_v49 = vand.u32 8388607, %v462_v41 }
  0x37   :  { %v876_v46 = vadd.s32 4294967169, %v100_v43  ;;  %v104_v47 = vor.u32 8388608, %v103_v44 }
  0x38   :  { %v882_v48 = vadd.s32 4294967169, %v466_v45  ;;  %v470_v54 = vor.u32 8388608, %v469_v49 }
  0x39   :  { %v106_v50 = vadd.s32 1, %v876_v46  ;;  %v1086_v53 = vshll.u32 %v104_v47, 8 }
  0x3a   :  { %v472_v51 = vadd.s32 1, %v882_v48  ;;  %v1096_v7 = vshll.u32 %v470_v54, 8 }
  0x3b   :  { %vm107_vm11 = vcmp.gt.s32.totalorder %v106_v50, 0  ;;  %v145_v6 = vand.u32 65535, %v1086_v53  ;;  %v146_v13 = vshrl.u32 %v1086_v53, 16 }
  0x3c   :  { %v108_v52 = vsel %vm107_vm11, %v106_v50, 0  ;;  %vm473_vm12 = vcmp.gt.s32.totalorder %v472_v51, 0 }
  0x3d   :  { %v110_v55 = vand.u32 31, %v108_v52  ;;  %v474_v56 = vsel %vm473_vm12, %v472_v51, 0  ;;  %v1088_v57 = vshrl.u32 %v108_v52, 5 }
  0x3e   :  { %v1090_v58 = vand.u32 31, %v474_v56  ;;  %v1114_v26 = vshrl.u32 %v474_v56, 5 }
  0x3f   :  { %v111_v59 = vsub.s32 32, %v110_v55  ;;  %v113_v61 = vshll.u32 %v1029_v60, %v110_v55  ;;  %v116_v63 = vshll.u32 %v1030_v62, %v110_v55  ;;  %v119_v1 = vshll.u32 %v1031_v0, %v110_v55 }
  0x40   :  { %v122_v3 = vshll.u32 %v1032_v2, %v110_v55  ;;  %v125_v5 = vshll.u32 %v1033_v4, %v110_v55  ;;  %vm128_vm13 = vcmp.lt.s32.totalorder %v1088_v57, 1  ;;  %vm131_vm14 = vcmp.lt.s32.totalorder %v1088_v57, 4 }
  0x41   :  { %v114_v9 = vshrl.u32 %v1030_v62, %v111_v59  ;;  %v117_v11 = vshrl.u32 %v1031_v0, %v111_v59  ;;  %v120_v12 = vshrl.u32 %v1032_v2, %v111_v59  ;;  %v123_v14 = vshrl.u32 %v1033_v4, %v111_v59 }
  0x42   :  { %v126_v16 = vshrl.u32 %v1034_v15, %v111_v59  ;;  %v1105_v20 = vsub.s32 32, %v1090_v58  ;;  %v112_v21 = vshrl.u32 %v1029_v60, %v111_v59  ;;  %vm130_vm15 = vcmp.lt.s32.totalorder %v1088_v57, 3 }
  0x43   :  { %v115_v17 = vor.u32 %v114_v9, %v113_v61  ;;  %v118_v18 = vor.u32 %v117_v11, %v116_v63  ;;  %v121_v19 = vor.u32 %v120_v12, %v119_v1  ;;  %v124_v22 = vor.u32 %v123_v14, %v122_v3 }
  0x44   :  { %v127_v23 = vor.u32 %v126_v16, %v125_v5  ;;  %vm129_vm0 = vcmp.lt.s32.totalorder %v1088_v57, 2  ;;  %v479_v29 = vshll.u32 %v1029_v60, %v1090_v58  ;;  %v482_v30 = vshll.u32 %v1030_v62, %v1090_v58 }
  0x45   :  { %v136_v24 = vsel %vm128_vm13, %v115_v17, %v118_v18  ;;  %v140_v25 = vsel %vm128_vm13, %v118_v18, %v121_v19  ;;  %v137_v27 = vsel %vm131_vm14, %v124_v22, 920167782  ;;  %v133_v31 = vsel %vm131_vm14, %v121_v19, 2102212464 }
  0x46   :  { %v141_v28 = vsel %vm131_vm14, %v127_v23, 1326507024  ;;  %v138_v32 = vsel %vm130_vm15, %v121_v19, %v137_v27  ;;  %v480_v34 = vshrl.u32 %v1030_v62, %v1105_v20  ;;  %v132_v35 = vsel %vm128_vm13, %v112_v21, %v115_v17 }
  0x47   :  { %v142_v33 = vsel %vm130_vm15, %v124_v22, %v141_v28  ;;  %v139_v36 = vsel %vm129_vm0, %v136_v24, %v138_v32  ;;  %v483_v42 = vshrl.u32 %v1031_v0, %v1105_v20  ;;  %v134_v47 = vsel %vm130_vm15, %v118_v18, %v133_v31 }
  0x48   :  { %v143_v39 = vsel %vm129_vm0, %v140_v25, %v142_v33  ;;  %v169_v45 = vand.u32 65535, %v139_v36  ;;  %v170_v46 = vshrl.u32 %v139_v36, 16  ;;  %v1139_v48 = vor.u32 %v480_v34, %v479_v29 }
  0x49   :  { %v147_v43 = vand.u32 65535, %v143_v39  ;;  %v148_v44 = vshrl.u32 %v143_v39, 16  ;;  %v1141_v49 = vor.u32 %v483_v42, %v482_v30  ;;  %v485_v50 = vshll.u32 %v1031_v0, %v1090_v58 }
  0x4a   :  { %v486_v55 = vshrl.u32 %v1032_v2, %v1105_v20  ;;  %v171_v59 = vmul.u32 %v169_v45, %v145_v6  ;;  %v172_v61 = vmul.u32 %v170_v46, %v145_v6  ;;  %v173_v62 = vmul.u32 %v169_v45, %v146_v13 }
  0x4b   :  { %v149_v51 = vmul.u32 %v147_v43, %v145_v6  ;;  %v150_v52 = vmul.u32 %v148_v44, %v145_v6  ;;  %v151_v54 = vmul.u32 %v147_v43, %v146_v13  ;;  %v152_v56 = vmul.u32 %v148_v44, %v146_v13 }
  0x4c   :  { %v174_v5 = vmul.u32 %v170_v46, %v146_v13  ;;  %v175_v11 = vshll.u32 %v172_v61, 16  ;;  %v176_v12 = vshrl.u32 %v172_v61, 16  ;;  %v177_v14 = vshll.u32 %v173_v62, 16 }
  0x4d   :  { %v153_v63 = vshll.u32 %v150_v52, 16  ;;  %v154_v1 = vshrl.u32 %v150_v52, 16  ;;  %v155_v3 = vshll.u32 %v151_v54, 16  ;;  %v156_v9 = vshrl.u32 %v151_v54, 16 }
  0x4e   :  { %v178_v16 = vshrl.u32 %v173_v62, 16  ;;  %v488_v17 = vshll.u32 %v1032_v2, %v1090_v58  ;;  %v1035_v18 = vmov 0   ;;  %vm179_vm2 = vc.u32 %v171_v59, %v175_v11 }
  0x4f   :  { %vm157_vm1 = vc.u32 %v149_v51, %v153_v63  ;;  %v159_v0 = vadd.s32 %v153_v63, %v149_v51  ;;  %v181_v6 = vadd.s32 %v175_v11, %v171_v59  ;;  %v489_v21 = vshrl.u32 %v1033_v4, %v1105_v20 }
  0x50   :  { %v158_v19 = vsel %vm157_vm1, 1, %v1035_v18  ;;  %v180_v13 = vsel %vm179_vm2, 1, %v1035_v18  ;;  %v491_v23 = vshll.u32 %v1033_v4, %v1090_v58  ;;  %v1155_v2 = vor.u32 %v486_v55, %v485_v50 }
  0x51   :  { %v160_v22 = vadd.s32 %v158_v19, %v152_v56  ;;  %vm161_vm3 = vc.u32 %v159_v0, %v155_v3  ;;  %v182_v25 = vadd.s32 %v180_v13, %v174_v5  ;;  %vm183_vm4 = vc.u32 %v181_v6, %v177_v14 }
  0x52   :  { %v162_v24 = vsel %vm161_vm3, 1, %v1035_v18  ;;  %v184_v28 = vsel %vm183_vm4, 1, %v1035_v18  ;;  %v490_v29 = vor.u32 %v489_v21, %v488_v17  ;;  %v492_v30 = vshrl.u32 %v1034_v15, %v1105_v20 }
  0x53   :  { %v164_v27 = vadd.s32 %v162_v24, %v160_v22  ;;  %v1160_v31 = vadd.s32 %v181_v6, %v177_v14  ;;  %v186_v32 = vadd.s32 %v184_v28, %v182_v25  ;;  %vm494_vm5 = vcmp.lt.s32.totalorder %v1114_v26, 1 }
  0x54   :  { %vm496_vm6 = vcmp.lt.s32.totalorder %v1114_v26, 3  ;;  %v493_v4 = vor.u32 %v492_v30, %v491_v23  ;;  %vm495_vm7 = vcmp.lt.s32.totalorder %v1114_v26, 2  ;;  %vm497_vm8 = vcmp.lt.s32.totalorder %v1114_v26, 4 }
  0x55   :  { %v165_v58 = vadd.s32 %v164_v27, %v154_v1  ;;  %v135_v33 = vsel %vm129_vm0, %v132_v35, %v134_v47  ;;  %v187_v34 = vadd.s32 %v186_v32, %v176_v12  ;;  %v502_v15 = vsel %vm494_vm5, %v1139_v48, %v1141_v49 }
  0x56   :  { %v503_v36 = vsel %vm497_vm8, %v490_v29, 920167782  ;;  %v506_v57 = vsel %vm494_vm5, %v1141_v49, %v1155_v2  ;;  %v511_v35 = vand.u32 65535, %v1096_v7  ;;  %v507_v45 = vsel %vm497_vm8, %v493_v4, 1326507024 }
  0x57   :  { %v1174_v39 = vadd.s32 %v165_v58, %v156_v9  ;;  %v504_v42 = vsel %vm496_vm6, %v1155_v2, %v503_v36  ;;  %v188_v43 = vadd.s32 %v187_v34, %v178_v16  ;;  %v512_v46 = vshrl.u32 %v1096_v7, 16 }
  0x58   :  { %v505_v44 = vsel %vm495_vm7, %v502_v15, %v504_v42  ;;  %v189_v47 = vmul.u32 %v1086_v53, %v135_v33  ;;  %v508_v50 = vsel %vm496_vm6, %v490_v29, %v507_v45  ;;  %v478_v22 = vshrl.u32 %v1029_v60, %v1105_v20 }
  0x59   :  { %vm191_vm9 = vc.u32 %v1174_v39, %v1160_v31  ;;  %v535_v51 = vand.u32 65535, %v505_v44  ;;  %v192_v52 = vadd.s32 1, %v188_v43  ;;  %v509_v54 = vsel %vm495_vm7, %v506_v57, %v508_v50 }
  0x5a   :  { %v536_v55 = vshrl.u32 %v505_v44, 16  ;;  %v513_v56 = vand.u32 65535, %v509_v54  ;;  %v514_v59 = vshrl.u32 %v509_v54, 16  ;;  %v499_v20 = vsel %vm497_vm8, %v1155_v2, 2102212464 }
  0x5b   :  { %v193_v61 = vsel %vm191_vm9, %v192_v52, %v188_v43  ;;  %v537_v62 = vmul.u32 %v535_v51, %v511_v35  ;;  %v539_v1 = vmul.u32 %v535_v51, %v512_v46  ;;  %v498_v57 = vsel %vm494_vm5, %v478_v22, %v1139_v48 }
  0x5c   :  { %v538_v63 = vmul.u32 %v536_v55, %v511_v35  ;;  %v194_v3 = vadd.s32 %v193_v61, %v189_v47  ;;  %v515_v53 = vmul.u32 %v513_v56, %v511_v35  ;;  %v516_v5 = vmul.u32 %v514_v59, %v511_v35 }
  0x5d   :  { %v517_v9 = vmul.u32 %v513_v56, %v512_v46  ;;  %v518_v14 = vmul.u32 %v514_v59, %v512_v46  ;;  %v540_v17 = vmul.u32 %v536_v55, %v512_v46  ;;  %v543_v19 = vshll.u32 %v539_v1, 16 }
  0x5e   :  { %v541_v11 = vshll.u32 %v538_v63, 16  ;;  %v195_v12 = vadd.s32 536870912, %v194_v3  ;;  %v519_v0 = vshll.u32 %v516_v5, 16  ;;  %v520_v27 = vshrl.u32 %v516_v5, 16 }
  0x5f   :  { %v521_v16 = vshll.u32 %v517_v9, 16  ;;  %v542_v30 = vshrl.u32 %v538_v63, 16  ;;  %v522_v4 = vshrl.u32 %v517_v9, 16  ;;  %v544_v34 = vshrl.u32 %v539_v1, 16 }
  0x60   :  { %v1196_v6 = vshrl.u32 %v195_v12, 30  ;;  %vm523_vm10 = vc.u32 %v515_v53, %v519_v0  ;;  %v525_v21 = vadd.s32 %v519_v0, %v515_v53  ;;  %vm545_vm11 = vc.u32 %v537_v62, %v541_v11 }
  0x61   :  { %v524_v13 = vsel %vm523_vm10, 1, %v1035_v18  ;;  %v546_v23 = vsel %vm545_vm11, 1, %v1035_v18  ;;  %v547_v24 = vadd.s32 %v541_v11, %v537_v62  ;;  %v500_v44 = vsel %vm496_vm6, %v1141_v49, %v499_v20 }
  0x62   :  { %v197_v25 = vshll.u32 %v1196_v6, 30  ;;  %v526_v28 = vadd.s32 %v524_v13, %v518_v14  ;;  %vm527_vm12 = vc.u32 %v525_v21, %v521_v16  ;;  %v548_v32 = vadd.s32 %v546_v23, %v540_v17 }
  0x63   :  { %v528_v29 = vsel %vm527_vm12, 1, %v1035_v18  ;;  %vm549_vm13 = vc.u32 %v547_v24, %v543_v19  ;;  %v551_v45 = vadd.s32 %v547_v24, %v543_v19  ;;  %v501_v50 = vsel %vm495_vm7, %v498_v57, %v500_v44  ;;  %v1240_v57 = vld [vmem:[#allocation2] sm:$0xff] }
  0x64   :  { %v198_v58 = vsub.s32 %v194_v3, %v197_v25  ;;  %v530_v33 = vadd.s32 %v528_v29, %v526_v28  ;;  %v550_v60 = vsel %vm549_vm13, 1, %v1035_v18  ;;  %v190_v52 = vadd.s32 %v1160_v31, %v1174_v39 }
  0x65   :  { %v552_v15 = vadd.s32 %v550_v60, %v548_v32  ;;  %v555_v54 = vmul.u32 %v1096_v7, %v501_v50  ;;  %vm98_vm1 = vcmp.lt.s32.totalorder %v1074_v37, 0  ;;  %vm1225_vm2 = vcmp.le.f32.partialorder %v96_v38, 0.7853982 }
  0x66   :  { %vm199_vm14 = vcmp.lt.s32.totalorder %v198_v58, 0  ;;  %v200_v36 = vsub.s32 0, %v198_v58  ;;  %v531_v42 = vadd.s32 %v530_v33, %v520_v27  ;;  %v220_v13 = vsub.s32 4, %v1196_v6 }
  0x67   :  { %v553_v35 = vadd.s32 %v552_v15, %v542_v30  ;;  %vm464_vm6 = vcmp.lt.s32.totalorder %v1078_v40, 0  ;;  %vm1256_vm10 = vcmp.le.f32.partialorder %v462_v41, 0.7853982  ;;  %vm239_vm13 = vweird.f32 %v1074_v37 }
  0x68   :  { %v201_v43 = vsel %vm199_vm14, %v200_v36, %v198_v58  ;;  %v532_v18 = vadd.s32 %v531_v42, %v522_v4  ;;  %v221_v29 = vsel %vm98_vm1, %v220_v13, %v1196_v6  ;;  %v1244_v6 = vld [vmem:[#allocation2 + $0x8] sm:$0xff] }
  0x69   :  { %v202_v46 = vclz %v201_v43  ;;  %v554_v47 = vadd.s32 %v553_v35, %v544_v34  ;;  %v223_v15 = vsel %vm1225_vm2, 0, %v221_v29  ;;  %v1242_v35 = vld [vmem:[#allocation2 + $0x10] sm:$0xff] }
  0x6a   :  { %vm557_vm15 = vc.u32 %v532_v18, %v551_v45  ;;  %v556_v28 = vadd.s32 %v551_v45, %v532_v18  ;;  %v1246_v18 = vld [vmem:[#allocation2 + $0x18] sm:$0xff]  ;;  %v423_v50 = vadd.f32 %v1242_v35, %v1240_v57 }
  0x6b   :  { %v877_v2 = vadd.s32 4294967294, %v202_v46  ;;  %v558_v51 = vadd.s32 1, %v554_v47 }
  0x6d   :  { %vm878_vm0 = vcmp.lt.s32.totalorder %v877_v2, 0  ;;  %v559_v59 = vsel %vm557_vm15, %v558_v51, %v554_v47 }
  0x6e   :  { %v205_v48 = vsel %vm878_vm0, 0, %v877_v2  ;;  %v560_v63 = vadd.s32 %v559_v59, %v555_v54  ;;  %v394_v2 = vadd.s32 3, %v223_v15  ;;  %v424_v54 = vadd.f32 %v1246_v18, %v1244_v6 }
  0x6f   :  { %v206_v55 = vsub.s32 32, %v205_v48  ;;  %v207_v56 = vshll.u32 %v198_v58, %v205_v48  ;;  %v210_v49 = vsub.s32 4294967266, %v205_v48 }
  0x70   :  { %v561_v26 = vadd.s32 536870912, %v560_v63  ;;  %v395_v59 = vand.u32 3, %v394_v2 }
  0x71   :  { %v208_v61 = vshrl.u32 %v190_v52, %v206_v55  ;;  %v211_v62 = vadd.s32 127, %v210_v49 }
  0x72   :  { %v1219_v9 = vshrl.u32 %v561_v26, 30  ;;  %vm397_vm8 = vcmp.eq.s32.totalorder %v395_v59, 0  ;;  %vm400_vm9 = vcmp.eq.s32.totalorder %v395_v59, 2  ;;  %vm396_vm12 = vcmp.lt.s32.totalorder %v395_v59, 2 }
  0x73   :  { %v209_v1 = vor.u32 %v208_v61, %v207_v56  ;;  %v212_v3 = vshll.u32 %v211_v62, 23  ;;  %v240_v56 = vand.u32 3, %v223_v15  ;;  %v427_v61 = vmax.f32 %v423_v50, 1e-06 }
  0x74   :  { %v563_v31 = vshll.u32 %v1219_v9, 30 }
  0x75   :  { %v213_v53 = vor.u32 4788187, %v212_v3  ;;  %v216_v5 = vcvt.s32.f32 %v209_v1  ;;  %v428_v1 = vmax.f32 %v424_v54, 1e-06  ;;  %vm245_vm5 = vcmp.eq.s32.totalorder %v240_v56, 2 }
  0x76   :  { %v564_v7 = vsub.s32 %v560_v63, %v563_v31  ;;  %vm242_vm7 = vcmp.eq.s32.totalorder %v240_v56, 0  ;;  %909 = vrcp.f32 %v427_v61  ;;  %vm241_vm11 = vcmp.lt.s32.totalorder %v240_v56, 2 }
  0x77   :  { %v214_v11 = vand.u32 2147483647, %v213_v53  ;;  %v586_v53 = vsub.s32 4, %v1219_v9  ;;  %911 = vrcp.f32 %v428_v1 }
  0x78   :  { %vm565_vm3 = vcmp.lt.s32.totalorder %v564_v7, 0  ;;  %v566_v0 = vsub.s32 0, %v564_v7 }
  0x79   :  { %v217_v39 = vmul.f32 %v216_v5, %v214_v11 }
  0x7a   :  { %v567_v19 = vsel %vm565_vm3, %v566_v0, %v564_v7 }
  0x7b   :  { %v218_v14 = vxor.u32 2147483648, %v217_v39  ;;  %v568_v22 = vclz %v567_v19 }
  0x7c   :  { %v910_v19 = vpop.eup %909 }
  0x7d   :  { %v219_v16 = vsel %vm98_vm1, %v218_v14, %v217_v39  ;;  %v883_v24 = vadd.s32 4294967294, %v568_v22  ;;  %v587_v14 = vsel %vm464_vm6, %v586_v53, %v1219_v9 }
  0x7e   :  { %v222_v17 = vsel %vm1225_vm2, %v1074_v37, %v219_v16  ;;  %v805_v37 = vmul.f32 %v910_v19, %v427_v61 }
  0x7f   :  { %v224_v21 = vmul.f32 %v222_v17, %v222_v17  ;;  %vm884_vm4 = vcmp.lt.s32.totalorder %v883_v24, 0 }
  0x80   :  { %v571_v58 = vsel %vm884_vm4, 0, %v883_v24  ;;  %v1273_v24 = vld [vmem:[#allocation5 + $0x10] sm:$0xff]  ;;  %vm605_vm4 = vweird.f32 %v1078_v40 }
  0x81   :  { %v225_v23 = vmul.f32 -0.001358992, %v224_v21  ;;  %v232_v38 = vmul.f32 -0.00019511016, %v224_v21  ;;  %v572_v4 = vsub.s32 32, %v571_v58  ;;  %v573_v33 = vshll.u32 %v564_v7, %v571_v58 }
  0x82   :  { %v576_v60 = vsub.s32 4294967266, %v571_v58  ;;  %v1275_v58 = vld [vmem:[#allocation5 + $0x18] sm:$0xff] }
  0x83   :  { %v226_v25 = vadd.f32 0.041655596, %v225_v23  ;;  %v233_v27 = vadd.f32 0.008332121, %v232_v38  ;;  %v574_v36 = vshrl.u32 %v556_v28, %v572_v4  ;;  %v912_v23 = vpop.eup %911  ;;  %v1271_v38 = vld [vmem:[#allocation5] sm:$0xff] }
  0x84   :  { %v577_v42 = vadd.s32 127, %v576_v60  ;;  %v789_v60 = vadd.f32 %v1273_v24, %v1271_v38  ;;  %v809_v15 = vmul.f32 %v912_v23, %v428_v1 }
  0x85   :  { %v227_v30 = vmul.f32 %v226_v25, %v224_v21  ;;  %v234_v32 = vmul.f32 %v233_v27, %v224_v21  ;;  %v575_v45 = vor.u32 %v574_v36, %v573_v33 }
  0x86   :  { %v578_v46 = vshll.u32 %v577_v42, 23  ;;  %v810_v54 = vsub.f32 2.0, %v809_v15 }
  0x87   :  { %v228_v20 = vadd.f32 -0.4999988, %v227_v30  ;;  %v235_v34 = vadd.f32 -0.16666654, %v234_v32  ;;  %v582_v52 = vcvt.s32.f32 %v575_v45  ;;  %v431_v32 = vld [vmem:[#allocation5 + $0x8] sm:$0xff] }
  0x88   :  { %v579_v51 = vor.u32 4788187, %v578_v46  ;;  %v790_v46 = vadd.f32 %v1275_v58, %v431_v32 }
  0x89   :  { %v229_v43 = vmul.f32 %v228_v20, %v224_v21  ;;  %v236_v44 = vmul.f32 %v235_v34, %v224_v21  ;;  %v589_v21 = vsel %vm1256_vm10, 0, %v587_v14 }
  0x8a   :  { %v580_v49 = vand.u32 2147483647, %v579_v51  ;;  %v606_v29 = vand.u32 3, %v589_v21  ;;  %v760_v30 = vadd.s32 3, %v589_v21  ;;  %v793_v51 = vmax.f32 %v789_v60, 1e-06 }
  0x8b   :  { %v237_v47 = vadd.f32 1.0, %v236_v44  ;;  %v230_v48 = vadd.f32 1.0, %v229_v43  ;;  %v63_v60 = vld [vmem:[#allocation7 + $0x8] sm:$0xff] }
  0x8c   :  { %v583_v62 = vmul.f32 %v582_v52, %v580_v49  ;;  %vm607_vm14 = vcmp.lt.s32.totalorder %v606_v29, 2  ;;  %v761_v45 = vand.u32 3, %v760_v30  ;;  %vm608_vm15 = vcmp.eq.s32.totalorder %v606_v29, 0  ;;  %v62_v30 = vld [vmem:[#allocation7] sm:$0xff] }
  0x8d   :  { %v238_v55 = vmul.f32 %v237_v47, %v222_v17  ;;  %v246_v63 = vxor.u32 2147483648, %v230_v48  ;;  %v806_v47 = vsub.f32 2.0, %v805_v37  ;;  %vm611_vm0 = vcmp.eq.s32.totalorder %v606_v29, 2 }
  0x8e   :  { %v584_v26 = vxor.u32 2147483648, %v583_v62  ;;  %vm762_vm1 = vcmp.lt.s32.totalorder %v761_v45, 2  ;;  %vm766_vm2 = vcmp.eq.s32.totalorder %v761_v45, 2  ;;  %v794_v49 = vmax.f32 %v790_v46, 1e-06 }
  0x8f   :  { %v243_v3 = vxor.u32 2147483648, %v238_v55  ;;  %v247_v11 = vsel %vm245_vm5, %v246_v63, %v238_v55  ;;  %v402_v7 = vsel %vm400_vm9, %v246_v63, %v238_v55  ;;  %v807_v59 = vmul.f32 %v910_v19, %v806_v47 }
  0x90   :  { %v585_v12 = vsel %vm464_vm6, %v584_v26, %v583_v62  ;;  %vm763_vm3 = vcmp.eq.s32.totalorder %v761_v45, 0  ;;  %913 = vrcp.f32 %v793_v51  ;;  %v811_v26 = vmul.f32 %v912_v23, %v810_v54 }
  0x91   :  { %v244_v31 = vsel %vm242_vm7, %v230_v48, %v243_v3  ;;  %v399_v39 = vsel %vm397_vm8, %v230_v48, %v243_v3  ;;  %v588_v41 = vsel %vm1256_vm10, %v1078_v40, %v585_v12  ;;  %915 = vrcp.f32 %v794_v49 }
  0x92   :  { %v590_v0 = vmul.f32 %v588_v41, %v588_v41  ;;  %v248_v16 = vsel %vm241_vm11, %v244_v31, %v247_v11  ;;  %v403_v17 = vsel %vm396_vm12, %v399_v39, %v402_v7  ;;  %v816_v31 = vmul.f32 %v807_v59, %v793_v51 }
  0x93   :  { %v249_v9 = vsel %vm239_vm13, nan, %v248_v16  ;;  %v404_v25 = vsel %vm239_vm13, nan, %v403_v17  ;;  %v429_v45 = vmax.f32 %v1066_v8, 1e-06 }
  0x94   :  { %v591_v22 = vmul.f32 -0.001358992, %v590_v0  ;;  %v598_v13 = vmul.f32 -0.00019511016, %v590_v0  ;;  %v405_v20 = vmul.f32 %v249_v9, %v1240_v57  ;;  %v406_v34 = vmul.f32 %v404_v25, %v1244_v6 }
  0x95   :  { %v414_v36 = vmul.f32 %v404_v25, %v1240_v57  ;;  %v415_v42 = vmul.f32 %v249_v9, %v1244_v6  ;;  %v408_v48 = vmul.f32 %v249_v9, %v1242_v35  ;;  %v417_v57 = vmul.f32 %v404_v25, %v1242_v35 }
  0x96   :  { %v592_v27 = vadd.f32 0.041655596, %v591_v22  ;;  %v599_v28 = vadd.f32 0.008332121, %v598_v13  ;;  %v407_v52 = vadd.f32 %v406_v34, %v405_v20  ;;  %v410_v1 = vmul.f32 %v404_v25, %v1246_v18 }
  0x97   :  { %v416_v55 = vsub.f32 %v414_v36, %v415_v42  ;;  %v419_v3 = vmul.f32 %v249_v9, %v1246_v18  ;;  %v914_v18 = vpop.eup %913  ;;  %917 = vlog2.f32 %v816_v31 }
  0x98   :  { %v593_v4 = vmul.f32 %v592_v27, %v590_v0  ;;  %v600_v33 = vmul.f32 %v599_v28, %v590_v0  ;;  %v409_v63 = vsub.f32 %v407_v52, %v408_v48  ;;  %v916_v25 = vpop.eup %915  ;;  %v797_v34 = vmul.f32 %v914_v18, %v793_v51 }
  0x99   :  { %v418_v53 = vsub.f32 %v416_v55, %v417_v57  ;;  %v801_v36 = vmul.f32 %v916_v25, %v794_v49 }
  0x9a   :  { %v594_v43 = vadd.f32 -0.4999988, %v593_v4  ;;  %v601_v44 = vadd.f32 -0.16666654, %v600_v33  ;;  %v411_v12 = vsub.f32 %v409_v63, %v410_v1  ;;  %v798_v47 = vsub.f32 2.0, %v797_v34 }
  0x9b   :  { %v420_v16 = vadd.f32 %v419_v3, %v418_v53  ;;  %v802_v52 = vsub.f32 2.0, %v801_v36 }
  0x9c   :  { %v595_v2 = vmul.f32 %v594_v43, %v590_v0  ;;  %v602_v50 = vmul.f32 %v601_v44, %v590_v0  ;;  %v819_v0 = vmul.f32 %v811_v26, %v794_v49  ;;  %v412_v27 = vmul.f32 0.5, %v411_v12 }
  0x9d   :  { %v421_v37 = vmul.f32 0.5, %v420_v16  ;;  %v803_v59 = vmul.f32 %v916_v25, %v802_v52 }
  0x9e   :  { %v596_v6 = vadd.f32 1.0, %v595_v2  ;;  %v603_v56 = vadd.f32 1.0, %v602_v50  ;;  %919 = vlog2.f32 %v819_v0  ;;  %v795_v50 = vmax.f32 %v1068_v10, 1e-06 }
  0xa0   :  { %v604_v61 = vmul.f32 %v603_v56, %v588_v41  ;;  %v612_v62 = vxor.u32 2147483648, %v596_v6  ;;  %v799_v56 = vmul.f32 %v914_v18, %v798_v47 }
  0xa2   :  { %v609_v5 = vxor.u32 2147483648, %v604_v61  ;;  %v613_v35 = vsel %vm611_vm0, %v612_v62, %v604_v61  ;;  %v768_v11 = vsel %vm766_vm2, %v612_v62, %v604_v61  ;;  %v822_v61 = vsub.f32 %v795_v50, %v429_v45 }
  0xa4   :  { %v610_v39 = vsel %vm608_vm15, %v596_v6, %v609_v5  ;;  %v765_v7 = vsel %vm763_vm3, %v596_v6, %v609_v5  ;;  %v823_v53 = vmul.f32 0.63661975, %v822_v61 }
  0xa5   :  { %v614_v14 = vsel %vm607_vm14, %v610_v39, %v613_v35  ;;  %v769_v41 = vsel %vm762_vm1, %v765_v7, %v768_v11 }
  0xa6   :  { %v615_v17 = vsel %vm605_vm4, nan, %v614_v14  ;;  %v770_v19 = vsel %vm605_vm4, nan, %v769_v41  ;;  %v852_v18 = vmul.f32 %v823_v53, %v823_v53  ;;  %vm851_vm9 = vcmp.lt.f32.partialorder %v823_v53, 1.0 }
  0xa7   :  { %v771_v21 = vmul.f32 %v615_v17, %v1271_v38  ;;  %v772_v22 = vmul.f32 %v770_v19, %v431_v32  ;;  %v774_v40 = vmul.f32 %v615_v17, %v1273_v24  ;;  %v780_v13 = vmul.f32 %v770_v19, %v1271_v38  ;;  %v918_v38 = vpop.eup %917 }
  0xa8   :  { %v781_v23 = vmul.f32 %v615_v17, %v431_v32  ;;  %v783_v9 = vmul.f32 %v770_v19, %v1273_v24  ;;  %v776_v29 = vmul.f32 %v770_v19, %v1275_v58  ;;  %v785_v33 = vmul.f32 %v615_v17, %v1275_v58  ;;  %v920_v44 = vpop.eup %919 }
  0xa9   :  { %v773_v28 = vadd.f32 %v772_v22, %v771_v21  ;;  %v413_v32 = vadd.f32 %v412_v27, %v62_v30  ;;  %v422_v24 = vadd.f32 %v421_v37, %v63_v60  ;;  %v818_v58 = vmul.f32 0.6931472, %v918_v38 }
  0xaa   :  { %v782_v4 = vsub.f32 %v780_v13, %v781_v23  ;;  %v821_v57 = vmul.f32 0.6931472, %v920_v44  ;;  %v853_v13 = vmul.f32 0.5, %v852_v18  ;;  %v892_v23 = vadd.f32 -0.5, %v823_v53 }
  0xab   :  { %v775_v20 = vsub.f32 %v773_v28, %v774_v40  ;;  %v425_v48 = vmax.f32 %v413_v32, 1e-06  ;;  %v426_v51 = vmax.f32 %v422_v24, 1e-06  ;;  %v838_v62 = vmul.f32 %v818_v58, %v818_v58 }
  0xac   :  { %v784_v15 = vsub.f32 %v782_v4, %v783_v9  ;;  %v845_v1 = vmul.f32 %v821_v57, %v821_v57  ;;  %v890_v5 = vadd.f32 -0.5, %v818_v58  ;;  %vm837_vm5 = vcmp.lt.f32.partialorder %v818_v58, 1.0 }
  0xad   :  { %v777_v42 = vsub.f32 %v775_v20, %v776_v29  ;;  %v839_v10 = vmul.f32 0.5, %v838_v62  ;;  %v891_v31 = vadd.f32 -0.5, %v821_v57  ;;  %vm844_vm8 = vcmp.lt.f32.partialorder %v821_v57, 1.0 }
  0xae   :  { %v786_v43 = vadd.f32 %v785_v33, %v784_v15  ;;  %v846_v12 = vmul.f32 0.5, %v845_v1  ;;  %v855_v28 = vsel %vm851_vm9, %v853_v13, %v892_v23 }
  0xaf   :  { %v778_v46 = vmul.f32 0.5, %v777_v42  ;;  %v841_v0 = vsel %vm837_vm5, %v839_v10, %v890_v5 }
  0xb0   :  { %v787_v2 = vmul.f32 0.5, %v786_v43  ;;  %v848_v21 = vsel %vm844_vm8, %v846_v12, %v891_v31  ;;  %v842_v40 = vmul.f32 5.0, %v841_v0 }
  0xb1   :  { %v779_v54 = vadd.f32 %v778_v46, %v62_v30  ;;  %v849_v25 = vmul.f32 5.0, %v848_v21 }
  0xb2   :  { %v788_v55 = vadd.f32 %v787_v2, %v63_v60 }
  0xb3   :  { %v791_v6 = vmax.f32 %v779_v54, 1e-06 }
  0xb4   :  { %v792_v49 = vmax.f32 %v788_v55, 1e-06 }
  0xb5   :  { %v812_v63 = vsub.f32 %v791_v6, %v425_v48 }
  0xb6   :  { %v814_v8 = vsub.f32 %v792_v49, %v426_v51 }
  0xb7   :  { %v813_v3 = vmul.f32 %v812_v63, %v799_v56 }
  0xb8   :  { %v815_v26 = vmul.f32 %v814_v8, %v803_v59 }
  0xb9   :  { %v825_v35 = vmul.f32 %v813_v3, %v813_v3  ;;  %v888_v11 = vadd.f32 -0.5, %v813_v3  ;;  %vm824_vm6 = vcmp.lt.f32.partialorder %v813_v3, 1.0 }
  0xba   :  { %v831_v39 = vmul.f32 %v815_v26, %v815_v26  ;;  %v889_v7 = vadd.f32 -0.5, %v815_v26  ;;  %vm830_vm7 = vcmp.lt.f32.partialorder %v815_v26, 1.0 }
  0xbb   :  { %v826_v14 = vmul.f32 0.5, %v825_v35 }
  0xbc   :  { %v832_v41 = vmul.f32 0.5, %v831_v39 }
  0xbd   :  { %v828_v16 = vsel %vm824_vm6, %v826_v14, %v888_v11 }
  0xbe   :  { %v829_v17 = vmul.f32 10.0, %v828_v16  ;;  %v834_v19 = vsel %vm830_vm7, %v832_v41, %v889_v7 }
  0xbf   :  { %v835_v22 = vmul.f32 10.0, %v834_v19 }
  0xc1   :  { %v836_v9 = vadd.f32 %v835_v22, %v829_v17 }
  0xc3   :  { %v843_v27 = vadd.f32 %v842_v40, %v836_v9 }
  0xc5   :  { %v850_v29 = vadd.f32 %v849_v25, %v843_v27 }
  0xc7   :  { %v856_v30 = vadd.f32 %v855_v28, %v850_v29 }
  0xc9   :  { %857 = vst [vmem:[#allocation8] sm:$0xff] %v856_v30 }
  0xca   :  { %868 = dma.vmem_to_hbm [thread:$0]  %s864_s2, 128, %s866_s30, [#allocation4]  }
  0xcb   :  { %1021 = dma.done.wait [#allocation4], 128  }
  0xcc   :  { %1022 = vsyncadd [#allocation4], 4294967168 }
  0xcd   :  { %873 = vsyncpa [#allocation3], 1 }
  0xce   :  { %874 = vsyncpa [#allocation6], 1 }
  0xcf   :  { %875 = vsyncpa [#allocation4], 1 }

</bundles_post_ra>
